<compile_context>
chip_gen: v5e
topology: v5e:2x2
jax: 0.10.0
libtpu: 0.0.40
codegen_flags: <defaults>
</compile_context>

<pallas_src>
import jax
import jax.numpy as jnp
from jax.experimental import pallas as pl
from jax.experimental.pallas import tpu as pltpu

_LANE = 128      # vreg lane width
_SUBLANE = 8     # f32 sublane tile (16 for 2-byte dtypes)
_MAX_TB = 4096   # max batch tile; ~2.5 MiB double-buffered footprint in f32


def _cdiv(a, m):
    return -(-a // m)


def _round_up(x, m):
    return _cdiv(x, m) * m


def _pad2d(a, rows, cols):
    """Zero-pad a 2-D array up to (rows, cols)."""
    return jnp.pad(a, ((0, rows - a.shape[0]), (0, cols - a.shape[1])))


def _mlp_kernel(x_ref, w1_ref, b1_ref, w2_ref, b2_ref, w3_ref, b3_ref, o_ref):
    # Hidden layer 1: Linear + ReLU. Padded hidden lanes stay exactly 0
    # (zero weight columns, zero bias, ReLU(0)=0).
    h = jnp.dot(x_ref[...], w1_ref[...], preferred_element_type=jnp.float32)
    h = jnp.maximum(h + b1_ref[...], 0.0)
    # Hidden layer 2: Linear + ReLU. (astype is a no-op in the f32 path; in the
    # bf16 path it feeds the MXU bf16 operands while accumulating in f32.)
    h = jnp.dot(h.astype(w2_ref.dtype), w2_ref[...], preferred_element_type=jnp.float32)
    h = jnp.maximum(h + b2_ref[...], 0.0)
    # Output layer: Linear only (softmax=False, num_atoms=1). Narrow (tb, out_dim)
    # block -> only the real logits are written back to HBM.
    out = jnp.dot(h.astype(w3_ref.dtype), w3_ref[...], preferred_element_type=jnp.float32)
    o_ref[...] = (out + b3_ref[...]).astype(o_ref.dtype)


def prepare_params(params, io_dtype=jnp.float32):
    """One-time parameter prep: pad hidden dims to the 128-lane width and
    (optionally) cast the MXU operands to bf16. Call once, reuse across steps.

    params: dict of w1,b1,w2,b2,w3,b3; w_i shaped (in, out), b_i shaped (1, out)
            (torch nn.Linear weight transposed).
    """
    w1, b1 = params["w1"], params["b1"]
    w2, b2 = params["w2"], params["b2"]
    w3, b3 = params["w3"], params["b3"]
    in_dim = w1.shape[0]
    out_dim = w3.shape[1]
    h1_p = _round_up(w1.shape[1], _LANE)
    h2_p = _round_up(w2.shape[1], _LANE)
    io_dtype = jnp.dtype(io_dtype)
    return {
        # MXU operands in io_dtype; biases stay f32 (bias-add / ReLU run in f32).
        "w1": _pad2d(w1, in_dim, h1_p).astype(io_dtype),
        "b1": _pad2d(b1, 1, h1_p).astype(jnp.float32),
        "w2": _pad2d(w2, h1_p, h2_p).astype(io_dtype),
        "b2": _pad2d(b2, 1, h2_p).astype(jnp.float32),
        # Only the contraction dim of W3 is padded; output dim stays narrow.
        "w3": _pad2d(w3, h2_p, out_dim).astype(io_dtype),
        "b3": b3.astype(jnp.float32),
    }


def rl_network_forward(obs, prepared):
    """RLNetwork.forward: obs -> (logits, state=None).

    obs: (B, *observation_shape), castable to float32.
    prepared: output of prepare_params (padded weights/biases).
    """
    w1, b1 = prepared["w1"], prepared["b1"]
    w2, b2 = prepared["w2"], prepared["b2"]
    w3, b3 = prepared["w3"], prepared["b3"]
    io_dtype = w1.dtype
    in_dim = w1.shape[0]
    out_dim = w3.shape[1]

    # Glue (matches torch.as_tensor(..., dtype=float32) + torch.flatten(start_dim=1)).
    x = jnp.asarray(obs, dtype=jnp.float32)
    b = x.shape[0]
    x = x.reshape(b, -1)
    assert x.shape[1] == in_dim, (x.shape, in_dim)
    if io_dtype != jnp.float32:
        x = x.astype(io_dtype)          # optional bf16 I/O path

    # --- Batch tiling -------------------------------------------------------
    # tb ~ ceil(b / n_tiles) rounded up to the sublane tile -> batch padding is
    # at most a few sublane rows. Force >= 2 tiles when the batch is big enough
    # so both v7x TensorCores get work (no-op on v5e/v6e).
    sub = _SUBLANE if io_dtype.itemsize == 4 else 2 * _SUBLANE
    n_tiles = _cdiv(b, _MAX_TB)
    if b > 2 * sub:
        n_tiles = max(n_tiles, 2)
    tb = _round_up(_cdiv(b, n_tiles), sub)
    b_pad = n_tiles * tb
    if b_pad != b:                      # skip the extra HBM copy when aligned
        x = jnp.pad(x, ((0, b_pad - b), (0, 0)))

    # Weights/biases: full-array blocks with constant index_map -> resident in
    # VMEM across all batch tiles. x / output: tiled along batch and
    # auto double-buffered by the BlockSpec pipeline.
    in_specs = [
        pl.BlockSpec((tb, in_dim), lambda i: (i, 0)),   # x tile
        pl.BlockSpec(w1.shape, lambda i: (0, 0)),       # W1 (resident)
        pl.BlockSpec(b1.shape, lambda i: (0, 0)),       # b1
        pl.BlockSpec(w2.shape, lambda i: (0, 0)),       # W2
        pl.BlockSpec(b2.shape, lambda i: (0, 0)),       # b2
        pl.BlockSpec(w3.shape, lambda i: (0, 0)),       # W3
        pl.BlockSpec(b3.shape, lambda i: (0, 0)),       # b3
    ]
    # Narrow output: last block dim == full array dim (out_dim), so only the
    # real logits are written back (32x less output HBM traffic vs a 128-lane slab).
    out_spec = pl.BlockSpec((tb, out_dim), lambda i: (i, 0))

    logits = pl.pallas_call(
        _mlp_kernel,
        out_shape=jax.ShapeDtypeStruct((b_pad, out_dim), jnp.float32),
        grid=(n_tiles,),
        in_specs=in_specs,
        out_specs=out_spec,
        compiler_params=pltpu.CompilerParams(
            dimension_semantics=("parallel",),   # v7x: both TCs split the batch
        ),
    )(x, w1, b1, w2, b2, w3, b3)

    if b_pad != b:
        logits = logits[:b]             # drop junk batch-padding rows
    state = None                        # stateful=False
    return logits, state


def _init_params(key, in_dim, hidden, out_dim):
    """Deterministic synthetic init (shapes match nn.Linear layers of the MLP)."""
    dims = [in_dim] + list(hidden) + [out_dim]
    params = {}
    for i in range(len(dims) - 1):
        key, k_w, k_b = jax.random.split(key, 3)
        fan_in, fan_out = dims[i], dims[i + 1]
        bound = 1.0 / jnp.sqrt(jnp.float32(fan_in))
        # weights stored as (in, out) == torch weight (out, in) transposed
        params[f"w{i + 1}"] = jax.random.uniform(
            k_w, (fan_in, fan_out), jnp.float32, -bound, bound
        )
        params[f"b{i + 1}"] = jax.random.uniform(
            k_b, (1, fan_out), jnp.float32, -bound, bound
        )
    return params


def _reference_forward(obs, params):
    x = jnp.asarray(obs, jnp.float32).reshape(obs.shape[0], -1)
    h = jnp.maximum(x @ params["w1"] + params["b1"], 0.0)
    h = jnp.maximum(h @ params["w2"] + params["b2"], 0.0)
    return h @ params["w3"] + params["b3"]


if __name__ == "__main__":
    key = jax.random.PRNGKey(0)

    observation_shape = (4, 16)      # flattened to 64
    hidden_sizes = (32, 32)
    action_dim = 4                   # action_shape=4, num_atoms=1
    in_dim = int(jnp.prod(jnp.array(observation_shape)))

    key, k_par = jax.random.split(key)
    params = _init_params(k_par, in_dim, hidden_sizes, action_dim)

    # Parameter prep (padding / optional cast) is hoisted out of the per-call
    # path: done once, reused for every forward call below.
    prepared_f32 = prepare_params(params)                   # exact f32 path
    prepared_bf16 = prepare_params(params, jnp.bfloat16)    # bandwidth-saving path

    # Small-batch check (module-default sized inputs).
    batch = 2
    key, k_obs = jax.random.split(key)
    obs = jax.random.normal(k_obs, (batch,) + observation_shape, jnp.float32)
    logits, state = rl_network_forward(obs, prepared_f32)
    logits = jax.block_until_ready(logits)
    ref = _reference_forward(obs, params)
    assert logits.shape == (batch, action_dim)
    assert state is None
    assert jnp.allclose(logits, ref, atol=1e-5, rtol=1e-5)

    # Larger ragged batch: exercises the multi-tile grid (2 tiles of 520 rows,
    # zero batch padding) and the two-TensorCore split on v7x.
    batch2 = 1040
    key, k_obs2 = jax.random.split(key)
    obs2 = jax.random.normal(k_obs2, (batch2,) + observation_shape, jnp.float32)
    logits2, state2 = rl_network_forward(obs2, prepared_f32)
    logits2 = jax.block_until_ready(logits2)
    ref2 = _reference_forward(obs2, params)
    assert logits2.shape == (batch2, action_dim)
    assert state2 is None
    assert jnp.allclose(logits2, ref2, atol=1e-5, rtol=1e-5)

    # Optional bf16 I/O path: halves every HBM stream, f32 MXU accumulate.
    # Not bit-exact by design -> loose tolerance only.
    logits3, state3 = rl_network_forward(obs2, prepared_bf16)
    logits3 = jax.block_until_ready(logits3)
    assert logits3.shape == (batch2, action_dim)
    assert state3 is None
    assert jnp.allclose(logits3, ref2, atol=1e-1, rtol=1e-1)

    print("KERNEL_OK")
</pallas_src>

<mosaic_0001>
module attributes {stable_mosaic.version = 11 : i64} {
  func.func @_mlp_kernel(%arg0: i32, %arg1: memref<8x64xf32, #tpu.memory_space<vmem>>, %arg2: memref<64x128xf32, #tpu.memory_space<vmem>>, %arg3: memref<1x128xf32, #tpu.memory_space<vmem>>, %arg4: memref<128x128xf32, #tpu.memory_space<vmem>>, %arg5: memref<1x128xf32, #tpu.memory_space<vmem>>, %arg6: memref<128x4xf32, #tpu.memory_space<vmem>>, %arg7: memref<1x4xf32, #tpu.memory_space<vmem>>, %arg8: memref<8x4xf32, #tpu.memory_space<vmem>>) attributes {dimension_semantics = [#tpu.dimension_semantics<parallel>], iteration_bounds = array<i64: 1>, scalar_prefetch = 0 : i64, scratch_operands = 0 : i64, tpu.core_type = #tpu.core_type<tc>, window_params = [{transform_indices = @transform_0, window_bounds = array<i64: 8, 64>}, {pipeline_mode = #tpu.pipeline_mode<synchronous>, transform_indices = @transform_1, window_bounds = array<i64: 64, 128>}, {pipeline_mode = #tpu.pipeline_mode<synchronous>, transform_indices = @transform_2, window_bounds = array<i64: 1, 128>}, {pipeline_mode = #tpu.pipeline_mode<synchronous>, transform_indices = @transform_3, window_bounds = array<i64: 128, 128>}, {pipeline_mode = #tpu.pipeline_mode<synchronous>, transform_indices = @transform_4, window_bounds = array<i64: 1, 128>}, {pipeline_mode = #tpu.pipeline_mode<synchronous>, transform_indices = @transform_5, window_bounds = array<i64: 128, 4>}, {pipeline_mode = #tpu.pipeline_mode<synchronous>, transform_indices = @transform_6, window_bounds = array<i64: 1, 4>}, {transform_indices = @transform_7, window_bounds = array<i64: 8, 4>}]} {
    %c0 = arith.constant 0 : index
    %c0_0 = arith.constant 0 : index
    %0 = vector.load %arg1[%c0, %c0_0] : memref<8x64xf32, #tpu.memory_space<vmem>>, vector<8x64xf32>
    %c0_1 = arith.constant 0 : index
    %c0_2 = arith.constant 0 : index
    %1 = vector.load %arg2[%c0_1, %c0_2] : memref<64x128xf32, #tpu.memory_space<vmem>>, vector<64x128xf32>
    %cst = arith.constant dense<0.000000e+00> : vector<8x128xf32>
    %2 = tpu.matmul %0, %1, %cst {dimension_numbers = #tpu.dot_dimension_numbers<[1], [0], [0], [1], [0, 0, 1, 1], [], []>} : vector<8x64xf32>, vector<64x128xf32>, vector<8x128xf32> -> vector<8x128xf32>
    %c0_3 = arith.constant 0 : index
    %c0_4 = arith.constant 0 : index
    %3 = vector.load %arg3[%c0_3, %c0_4] : memref<1x128xf32, #tpu.memory_space<vmem>>, vector<1x128xf32>
    %4 = vector.broadcast %3 : vector<1x128xf32> to vector<8x128xf32>
    %5 = arith.addf %2, %4 : vector<8x128xf32>
    %cst_5 = arith.constant 0.000000e+00 : f32
    %6 = vector.broadcast %cst_5 : f32 to vector<8x128xf32>
    %7 = arith.maximumf %5, %6 : vector<8x128xf32>
    %c0_6 = arith.constant 0 : index
    %c0_7 = arith.constant 0 : index
    %8 = vector.load %arg4[%c0_6, %c0_7] : memref<128x128xf32, #tpu.memory_space<vmem>>, vector<128x128xf32>
    %cst_8 = arith.constant dense<0.000000e+00> : vector<8x128xf32>
    %9 = tpu.matmul %7, %8, %cst_8 {dimension_numbers = #tpu.dot_dimension_numbers<[1], [0], [0], [1], [0, 0, 1, 1], [], []>} : vector<8x128xf32>, vector<128x128xf32>, vector<8x128xf32> -> vector<8x128xf32>
    %c0_9 = arith.constant 0 : index
    %c0_10 = arith.constant 0 : index
    %10 = vector.load %arg5[%c0_9, %c0_10] : memref<1x128xf32, #tpu.memory_space<vmem>>, vector<1x128xf32>
    %11 = vector.broadcast %10 : vector<1x128xf32> to vector<8x128xf32>
    %12 = arith.addf %9, %11 : vector<8x128xf32>
    %cst_11 = arith.constant 0.000000e+00 : f32
    %13 = vector.broadcast %cst_11 : f32 to vector<8x128xf32>
    %14 = arith.maximumf %12, %13 : vector<8x128xf32>
    %c0_12 = arith.constant 0 : index
    %c0_13 = arith.constant 0 : index
    %15 = vector.load %arg6[%c0_12, %c0_13] : memref<128x4xf32, #tpu.memory_space<vmem>>, vector<128x4xf32>
    %cst_14 = arith.constant dense<0.000000e+00> : vector<8x4xf32>
    %16 = tpu.matmul %14, %15, %cst_14 {dimension_numbers = #tpu.dot_dimension_numbers<[1], [0], [0], [1], [0, 0, 1, 1], [], []>} : vector<8x128xf32>, vector<128x4xf32>, vector<8x4xf32> -> vector<8x4xf32>
    %c0_15 = arith.constant 0 : index
    %c0_16 = arith.constant 0 : index
    %17 = vector.load %arg7[%c0_15, %c0_16] : memref<1x4xf32, #tpu.memory_space<vmem>>, vector<1x4xf32>
    %18 = vector.broadcast %17 : vector<1x4xf32> to vector<8x4xf32>
    %19 = arith.addf %16, %18 : vector<8x4xf32>
    %c0_17 = arith.constant 0 : index
    %c0_18 = arith.constant 0 : index
    %20 = vector.load %arg8[%c0_17, %c0_18] : memref<8x4xf32, #tpu.memory_space<vmem>>, vector<8x4xf32>
    tpu.vector_store %arg8[%c0_17, %c0_18], %19 {strides = array<i32>} : memref<8x4xf32, #tpu.memory_space<vmem>>, vector<8x4xf32>,
    return
  }
  func.func @transform_0(%arg0: i32) -> (i32, i32) {
    %c0_i32 = arith.constant 0 : i32
    %c0_i32_0 = arith.constant 0 : i32
    return %arg0, %c0_i32 : i32, i32
  }
  func.func @transform_1(%arg0: i32) -> (i32, i32) {
    %c0_i32 = arith.constant 0 : i32
    %c0_i32_0 = arith.constant 0 : i32
    %c0_i32_1 = arith.constant 0 : i32
    return %c0_i32, %c0_i32_0 : i32, i32
  }
  func.func @transform_2(%arg0: i32) -> (i32, i32) {
    %c0_i32 = arith.constant 0 : i32
    %c0_i32_0 = arith.constant 0 : i32
    %c0_i32_1 = arith.constant 0 : i32
    return %c0_i32, %c0_i32_0 : i32, i32
  }
  func.func @transform_3(%arg0: i32) -> (i32, i32) {
    %c0_i32 = arith.constant 0 : i32
    %c0_i32_0 = arith.constant 0 : i32
    %c0_i32_1 = arith.constant 0 : i32
    return %c0_i32, %c0_i32_0 : i32, i32
  }
  func.func @transform_4(%arg0: i32) -> (i32, i32) {
    %c0_i32 = arith.constant 0 : i32
    %c0_i32_0 = arith.constant 0 : i32
    %c0_i32_1 = arith.constant 0 : i32
    return %c0_i32, %c0_i32_0 : i32, i32
  }
  func.func @transform_5(%arg0: i32) -> (i32, i32) {
    %c0_i32 = arith.constant 0 : i32
    %c0_i32_0 = arith.constant 0 : i32
    %c0_i32_1 = arith.constant 0 : i32
    return %c0_i32, %c0_i32_0 : i32, i32
  }
  func.func @transform_6(%arg0: i32) -> (i32, i32) {
    %c0_i32 = arith.constant 0 : i32
    %c0_i32_0 = arith.constant 0 : i32
    %c0_i32_1 = arith.constant 0 : i32
    return %c0_i32, %c0_i32_0 : i32, i32
  }
  func.func @transform_7(%arg0: i32) -> (i32, i32) {
    %c0_i32 = arith.constant 0 : i32
    %c0_i32_0 = arith.constant 0 : i32
    return %arg0, %c0_i32 : i32, i32
  }
}

</mosaic_0001>

<bundles_post_ra>
// kernel: tpu_custom_call.1
= control target key start
LH: loop header
LB: loop body
LE: loop exit
PB: predicated region body
PF: predicated region fallthrough
CT: control target
= control target key end

     0   :  { %12 = vsyncpa [#allocation3], 0  ;;  %s401_s0 = inlined_call_operand.hbm [shape: f32[8,64], index: 0, kind: input, shape index: {}]   ;;  %s402_s1 = inlined_call_operand.hbm [shape: f32[64,128], index: 1, kind: input, shape index: {}]   ;;  %s403_s2 = inlined_call_operand.vmem [shape: f32[1,128], index: 2, kind: input, shape index: {}]   ;;  %s404_s3 = inlined_call_operand.vmem [shape: f32[128,128], index: 3, kind: input, shape index: {}]   ;;  %s405_s4 = inlined_call_operand.vmem [shape: f32[1,128], index: 4, kind: input, shape index: {}]   ;;  %s406_s5 = inlined_call_operand.vmem [shape: f32[128,4], index: 5, kind: input, shape index: {}]   ;;  %s407_s6 = inlined_call_operand.vmem [shape: f32[1,4], index: 6, kind: input, shape index: {}]   ;;  %s408_s7 = inlined_call_operand.vmem [shape: f32[8,4], index: 7, kind: output, shape index: {}]  }
   0x1   :  { %s19_s26 = sshll.u32 %s401_s0, 4  ;;  %s20_s26 = int_to_ptr.hbm [resolvable:$true] %s19_s26 }
   0x2   :  { %13 = vsyncpa [#allocation5], 0  ;;  %s243_s27 = smov [#allocation2]   ;;  %s29_s8 = sshll.u32 %s402_s1, 4  ;;  %s30_s8 = int_to_ptr.hbm [resolvable:$true] %s29_s8 }
   0x3   :  { %s21_s28 = sshll.u32 %s243_s27, 4  ;;  %s244_s9 = smov [#allocation4]   ;;  %s22_s28 = int_to_ptr.vmem [resolvable:$true] %s21_s28 }
   0x4   :  { %24 = dma.hbm_to_vmem [thread:$0]  %s20_s26, 128, %s22_s28, [#allocation3]  }
   0x5   :  { %s31_s10 = sshll.u32 %s244_s9, 4  ;;  %s245_s11 = smov 128   ;;  %s32_s10 = int_to_ptr.vmem [resolvable:$true] %s31_s10 }
   0x6   :  { %s246_s12 = smov 8  }
   0x7   :  { %37 = dma.hbm_to_vmem [thread:$0]  %s30_s8, 1024, %s32_s10, [#allocation5], %s245_s11, %s245_s11, %s246_s12  }
   0x8   :  { %239 = dma.done.wait [#allocation3], 128  }
   0x9   :  { %240 = vsyncadd [#allocation3], 4294967168 }
   0xa   :  { %241 = dma.done.wait [#allocation5], 1024  }
   0xb   :  { %242 = vsyncadd [#allocation5], 4294966272  ;;  %v64_v0 = vld [vmem:[#allocation4 + $0x38] sm:$0xff]  ;;  %v63_v1 = vld [vmem:[#allocation4 + $0x30] sm:$0xff]  ;;  %vm69_vm0 = vcmask 523264   ;;  %vm175_vm1 = vcmask 31744  }
   0xc   :  { %81 = vmatpush.msra.mxu0 %v64_v0  ;;  %v62_v2 = vld [vmem:[#allocation4 + $0x28] sm:$0xff]  ;;  %v109_v3 = vld [vmem:[%s404_s3 + $0x78] sm:$0xff]  ;;  %v61_v5 = vld [vmem:[#allocation4 + $0x20] sm:$0xff] }
   0xd   :  { %v108_v4 = vld [vmem:[%s404_s3 + $0x70] sm:$0xff]  ;;  %114 = vmatpush.msra.mxu1 %v109_v3  ;;  %v107_v6 = vld [vmem:[%s404_s3 + $0x68] sm:$0xff]  ;;  %v60_v7 = vld [vmem:[#allocation4 + $0x18] sm:$0xff] }
   0xe   :  { %82 = vmatpush.msra.mxu0 %v63_v1  ;;  %v106_v8 = vld [vmem:[%s404_s3 + $0x60] sm:$0xff]  ;;  %v59_v9 = vld [vmem:[#allocation4 + $0x10] sm:$0xff]  ;;  %v58_v11 = vld [vmem:[#allocation4 + $0x8] sm:$0xff] }
   0xf   :  { %115 = vmatpush.msra.mxu1 %v108_v4  ;;  %v105_v10 = vld [vmem:[%s404_s3 + $0x58] sm:$0xff]  ;;  %v104_v12 = vld [vmem:[%s404_s3 + $0x50] sm:$0xff]  ;;  %v57_v13 = vld [vmem:[#allocation4] sm:$0xff] }
  0x10   :  { %83 = vmatpush.msra.mxu0 %v62_v2  ;;  %v56_v14 = vld [vmem:[#allocation2] sm:$0xff]  ;;  %v103_v15 = vld [vmem:[%s404_s3 + $0x48] sm:$0xff]  ;;  %v101_v17 = vld [vmem:[%s404_s3 + $0x38] sm:$0xff] }
  0x11   :  { %116 = vmatpush.msra.mxu1 %v107_v6  ;;  %v102_v16 = vld [vmem:[%s404_s3 + $0x40] sm:$0xff]  ;;  %v100_v18 = vld [vmem:[%s404_s3 + $0x30] sm:$0xff]  ;;  %v99_v19 = vld [vmem:[%s404_s3 + $0x28] sm:$0xff] }
  0x12   :  { %84 = vmatpush.msra.mxu0 %v61_v5  ;;  %v98_v20 = vld [vmem:[%s404_s3 + $0x20] sm:$0xff]  ;;  %v97_v21 = vld [vmem:[%s404_s3 + $0x18] sm:$0xff]  ;;  %v96_v22 = vld [vmem:[%s404_s3 + $0x10] sm:$0xff] }
  0x13   :  { %117 = vmatpush.msra.mxu1 %v106_v8  ;;  %v95_v23 = vld [vmem:[%s404_s3 + $0x8] sm:$0xff]  ;;  %v94_v24 = vld [vmem:[%s404_s3] sm:$0xff]  ;;  %v150_v25 = vld [vmem:[%s406_s5 + $0x78] sm:$0xff] }
  0x14   :  { %85 = vmatpush.msra.mxu0 %v60_v7  ;;  %v149_v26 = vld [vmem:[%s406_s5 + $0x70] sm:$0xff]  ;;  %155 = vmatpush.msra.mxu2 %v150_v25  ;;  %v148_v27 = vld [vmem:[%s406_s5 + $0x68] sm:$0xff]  ;;  %v147_v28 = vld [vmem:[%s406_s5 + $0x60] sm:$0xff] }
  0x15   :  { %118 = vmatpush.msra.mxu1 %v105_v10  ;;  %v146_v29 = vld [vmem:[%s406_s5 + $0x58] sm:$0xff]  ;;  %v145_v30 = vld [vmem:[%s406_s5 + $0x50] sm:$0xff]  ;;  %v144_v31 = vld [vmem:[%s406_s5 + $0x48] sm:$0xff] }
  0x16   :  { %86 = vmatpush.msra.mxu0 %v59_v9  ;;  %156 = vmatpush.msra.mxu2 %v149_v26  ;;  %v143_v32 = vld [vmem:[%s406_s5 + $0x40] sm:$0xff]  ;;  %v142_v33 = vld [vmem:[%s406_s5 + $0x38] sm:$0xff]  ;;  %v141_v34 = vld [vmem:[%s406_s5 + $0x30] sm:$0xff] }
  0x17   :  { %119 = vmatpush.msra.mxu1 %v104_v12  ;;  %v140_v35 = vld [vmem:[%s406_s5 + $0x28] sm:$0xff]  ;;  %v139_v36 = vld [vmem:[%s406_s5 + $0x20] sm:$0xff]  ;;  %v138_v37 = vld [vmem:[%s406_s5 + $0x18] sm:$0xff] }
  0x18   :  { %87 = vmatpush.msra.mxu0 %v58_v11  ;;  %157 = vmatpush.msra.mxu2 %v148_v27  ;;  %v188_v38 = vld [vmem:[%s403_s2] ss:$0 sm:$0xff]  ;;  %v137_v42 = vld [vmem:[%s406_s5 + $0x10] sm:$0xff]  ;;  %v136_v43 = vld [vmem:[%s406_s5 + $0x8] sm:$0xff] }
  0x19   :  { %120 = vmatpush.msra.mxu1 %v103_v15  ;;  %v135_v44 = vld [vmem:[%s406_s5] sm:$0xff] }
  0x1a   :  { %88 = vmatpush.msra.mxu0 %v57_v13  ;;  %158 = vmatpush.msra.mxu2 %v147_v28  ;;  %v189_v45 = vld [vmem:[%s405_s4] ss:$0 sm:$0xff] }
  0x1b   :  { %183 = vmatmul.msk.f32.vlgmr.msra.gmra.mxu0 %vm69_vm0, %v56_v14  ;;  %121 = vmatpush.msra.mxu1 %v102_v16  ;;  %v190_v49 = vld [vmem:[%s407_s6] ss:$0 sm:$0xff] }
  0x1c   :  { %159 = vmatpush.msra.mxu2 %v146_v29 }
  0x1d   :  { %122 = vmatpush.msra.mxu1 %v101_v17 }
  0x1e   :  { %160 = vmatpush.msra.mxu2 %v145_v30 }
  0x1f   :  { %123 = vmatpush.msra.mxu1 %v100_v18 }
  0x20   :  { %161 = vmatpush.msra.mxu2 %v144_v31 }
  0x21   :  { %124 = vmatpush.msra.mxu1 %v99_v19 }
  0x22   :  { %162 = vmatpush.msra.mxu2 %v143_v32 }
  0x23   :  { %125 = vmatpush.msra.mxu1 %v98_v20 }
  0x24   :  { %163 = vmatpush.msra.mxu2 %v142_v33 }
  0x25   :  { %126 = vmatpush.msra.mxu1 %v97_v21 }
  0x26   :  { %164 = vmatpush.msra.mxu2 %v141_v34 }
  0x27   :  { %127 = vmatpush.msra.mxu1 %v96_v22 }
  0x28   :  { %165 = vmatpush.msra.mxu2 %v140_v35 }
  0x29   :  { %128 = vmatpush.msra.mxu1 %v95_v23 }
  0x2a   :  { %166 = vmatpush.msra.mxu2 %v139_v36 }
  0x2b   :  { %129 = vmatpush.msra.mxu1 %v94_v24 }
  0x2c   :  { %167 = vmatpush.msra.mxu2 %v138_v37 }
  0x2e   :  { %168 = vmatpush.msra.mxu2 %v137_v42 }
  0x30   :  { %169 = vmatpush.msra.mxu2 %v136_v43 }
  0x32   :  { %170 = vmatpush.msra.mxu2 %v135_v44 }
  0x98   :  { %v90_v39 = vpop.f32.mrf.mxu0 }
  0x99   :  { %v91_v40 = vadd.f32 %v188_v38, %v90_v39 }
  0x9b   :  { %v93_v41 = vmax.f32 %v91_v40, 0.0 }
  0x9d   :  { %130 = vmatmul.f32.vlgmr.msra.gmra.mxu1 %v93_v41 }
 0x11a   :  { %v131_v46 = vpop.f32.mrf.mxu1 }
 0x11b   :  { %v132_v47 = vadd.f32 %v189_v45, %v131_v46 }
 0x11d   :  { %v134_v48 = vmax.f32 %v132_v47, 0.0 }
 0x11f   :  { %171 = vmatmul.f32.vlgmr.msra.gmra.mxu2 %v134_v48 }
 0x1a2   :  { %v172_v50 = vpop.f32.mrf.mxu2 }
 0x1a3   :  { %v173_v51 = vadd.f32 %v190_v49, %v172_v50 }
 0x1a5   :  { %176 = vst.msk [vmem:[%s408_s7] sm:$0xff] %vm175_vm1, %v173_v51 }
 0x1a6   :  { %181 = vsyncpa [#allocation3], 1 }
 0x1a7   :  { %182 = vsyncpa [#allocation5], 1 }

</bundles_post_ra>
